<compile_context>
chip_gen: v6e
topology: v6e:2x2x1
jax: 0.10.0
libtpu: 0.0.40
codegen_flags: <defaults>
</compile_context>

<pallas_src>
import functools

import jax
import jax.numpy as jnp
import numpy as np
from jax.experimental import pallas as pl
from jax.experimental.pallas import tpu as pltpu


# ---------------------------------------------------------------------------
# Kernel 1: fused QKV projection
# ---------------------------------------------------------------------------
def _qkv_proj_kernel(x_ref, w_ref, b_ref, q_ref, k_ref, v_ref, *, d_model):
    # x_ref : (1, TS, D) bf16 activations for this (batch, seq-tile)
    # w_ref : (D, 3D)    bf16 [Wq^T * scale | Wk^T | Wv^T]   (single-buffered)
    # b_ref : (1, 3D)    f32  [bq * scale | bk | bv]
    # q/k/v : (1, TS, D) bf16 outputs
    x = x_ref[0]                                                     # (TS, D)
    qkv = jnp.dot(x, w_ref[...],
                  preferred_element_type=jnp.float32) + b_ref[...]  # (TS, 3D) f32
    qkv = qkv.astype(q_ref.dtype)
    q_ref[0] = qkv[:, :d_model]
    k_ref[0] = qkv[:, d_model:2 * d_model]
    v_ref[0] = qkv[:, 2 * d_model:]


# ---------------------------------------------------------------------------
# Kernel 2: flash-style attention + fused output projection
# ---------------------------------------------------------------------------
def _flash_attn_kernel(q_ref, k_ref, v_ref, wo_ref, bo_ref, out_ref,
                       m_sc, l_sc, acc_sc, *, num_heads, seq_len, block_k):
    # q_ref  : (1, TQ, D) bf16 (query scale already folded into the weights)
    # k_ref  : (1, TK, D) bf16
    # v_ref  : (1, TK, D) bf16
    # wo_ref : (D, D)     bf16 W_o^T                (single-buffered)
    # bo_ref : (1, D)     f32
    # out_ref: (1, TQ, D) output dtype
    # m_sc   : (TQ, H) f32 running max per head
    # l_sc   : (TQ, H) f32 running denom per head
    # acc_sc : (TQ, D) f32 unnormalized context (head h in columns [h*Hd, (h+1)*Hd))
    H = num_heads
    TQ, D = q_ref.shape[1], q_ref.shape[2]
    TK = k_ref.shape[1]
    Hd = D // H

    kj = pl.program_id(2)
    n_kt = pl.num_programs(2)

    @pl.when(kj == 0)
    def _():
        m_sc[...] = jnp.full(m_sc.shape, -jnp.inf, dtype=jnp.float32)
        l_sc[...] = jnp.zeros(l_sc.shape, dtype=jnp.float32)
        acc_sc[...] = jnp.zeros(acc_sc.shape, dtype=jnp.float32)

    q16 = q_ref[0]                                                   # (TQ, D) bf16
    k16 = k_ref[0]                                                   # (TK, D) bf16
    v16 = v_ref[0]                                                   # (TK, D) bf16

    ragged_kv = (seq_len % block_k) != 0       # trace-time constant
    if ragged_kv:
        col = kj * TK + jax.lax.broadcasted_iota(jnp.int32, (1, TK), 1)
        kv_mask = col < seq_len                                      # (1, TK)
        row = kj * TK + jax.lax.broadcasted_iota(jnp.int32, (TK, 1), 0)
        # Zero padded V rows so (p==0) * garbage never produces NaN.
        v16 = jnp.where(row < seq_len, v16, jnp.zeros_like(v16))

    # Per-head online softmax; each head's state flows through scratch refs so
    # only one head's (TQ, TK) tiles are live at a time.
    for h in range(H):
        lo = h * Hd
        qh = q16[:, lo:lo + Hd]                                      # (TQ, Hd)
        kh = k16[:, lo:lo + Hd]                                      # (TK, Hd)
        vh = v16[:, lo:lo + Hd]                                      # (TK, Hd)

        s = jnp.einsum('qe,ke->qk', qh, kh,
                       preferred_element_type=jnp.float32)           # (TQ, TK) f32
        if ragged_kv:
            s = jnp.where(kv_mask, s, -1e30)

        m_prev = m_sc[:, h:h + 1]                                    # (TQ, 1)
        l_prev = l_sc[:, h:h + 1]
        m_new = jnp.maximum(m_prev, jnp.max(s, axis=-1, keepdims=True))
        alpha = jnp.exp(m_prev - m_new)                              # (TQ, 1) f32
        # bf16 exp (EUP x2 on v6e/v7x); denominator accumulated in f32.
        p = jnp.exp((s - m_new).astype(jnp.bfloat16))                # (TQ, TK) bf16
        l_new = alpha * l_prev + jnp.sum(p.astype(jnp.float32),
                                         axis=-1, keepdims=True)
        pv = jnp.dot(p, vh, preferred_element_type=jnp.float32)      # (TQ, Hd) f32

        acc_sc[:, lo:lo + Hd] = alpha * acc_sc[:, lo:lo + Hd] + pv
        m_sc[:, h:h + 1] = m_new
        l_sc[:, h:h + 1] = l_new

    @pl.when(kj == n_kt - 1)
    def _():
        # Normalize the small (TQ, D) context instead of the (TQ, S) probs;
        # approximate reciprocal runs on the EUP slot.
        inv = pl.reciprocal(l_sc[...], approx=True)                  # (TQ, H)
        for h in range(H):
            lo = h * Hd
            acc_sc[:, lo:lo + Hd] = acc_sc[:, lo:lo + Hd] * inv[:, h:h + 1]
        ctx = acc_sc[...].astype(jnp.bfloat16)                       # (TQ, D)
        out = jnp.dot(ctx, wo_ref[...],
                      preferred_element_type=jnp.float32) + bo_ref[...]
        out_ref[0] = out.astype(out_ref.dtype)


# ---------------------------------------------------------------------------
# Wrapper
# ---------------------------------------------------------------------------
def _vmem_limit_bytes(estimate):
    # Explicit scoped-VMEM budget: 2x slack over the static estimate, floored
    # at the v6e/v7x default (32 MiB), capped at v7x physical VMEM (64 MiB).
    return int(min(64 * 2 ** 20, max(32 * 2 ** 20, 2 * estimate)))


def multiway_attention(hidden_states, params, num_heads):
    """hidden_states: (B, S, D) float32.  params: dict of nn.Linear weights."""
    B, S, D = hidden_states.shape
    H = num_heads
    Hd = D // H
    assert Hd * H == D
    scale = Hd ** (-0.5)

    f32, bf16 = jnp.float32, jnp.bfloat16

    # Tile sizes: 256 q rows / 512 kv rows (multiples of 128/256 for all MXU
    # generations); full S when the sequence is small.  Ragged final tiles are
    # handled by cdiv grids + masked output writeback (+ in-kernel kv masking).
    tq = S if S <= 256 else 256
    tk = S if S <= 512 else 512
    ts = S if S <= 256 else 256
    n_qt = pl.cdiv(S, tq)
    n_kt = pl.cdiv(S, tk)
    n_st = pl.cdiv(S, ts)

    # Pre-cast activations to bf16 (halves HBM read + VMEM for activations).
    x16 = hidden_states.astype(bf16)

    # nn.Linear stores weight as (out, in): y = x @ W.T + b.  Pre-transpose so
    # in-kernel matmuls are x @ Wt (lane-dense output), fold the query scale
    # into Wq/bq, fuse Wq/Wk/Wv into one (D, 3D) weight.  Weights bf16 (MXU
    # inputs); biases stay f32.
    wq_t = params['wq'].astype(f32).T * scale
    wqkv_t = jnp.concatenate(
        [wq_t, params['wk'].astype(f32).T, params['wv'].astype(f32).T],
        axis=1).astype(bf16)                                          # (D, 3D)
    bqkv = jnp.concatenate(
        [params['bq'].astype(f32) * scale,
         params['bk'].astype(f32),
         params['bv'].astype(f32)]).reshape(1, 3 * D)                 # (1, 3D) f32
    wo_t = params['wo'].astype(f32).T.astype(bf16)                    # (D, D)
    bo = params['bo'].astype(f32).reshape(1, D)                       # (1, D)

    # ---------------- QKV projection (once per token) ----------------
    proj_vmem = (2 * ts * D * 2            # x block (double-buffered bf16)
                 + D * 3 * D * 2           # fused weight (single-buffered bf16)
                 + 3 * D * 4               # bias
                 + 3 * 2 * ts * D * 2      # q/k/v output blocks (double-buffered)
                 + ts * 3 * D * 4)         # f32 matmul accumulator

    proj_kernel = functools.partial(_qkv_proj_kernel, d_model=D)
    q_b, k_b, v_b = pl.pallas_call(
        proj_kernel,
        grid=(B, n_st),
        in_specs=[
            pl.BlockSpec((1, ts, D), lambda b, si: (b, si, 0)),
            pl.BlockSpec((D, 3 * D), lambda b, si: (0, 0),
                         pipeline_mode=pl.Buffered(1)),
            pl.BlockSpec((1, 3 * D), lambda b, si: (0, 0),
                         pipeline_mode=pl.Buffered(1)),
        ],
        out_specs=(
            pl.BlockSpec((1, ts, D), lambda b, si: (b, si, 0)),
            pl.BlockSpec((1, ts, D), lambda b, si: (b, si, 0)),
            pl.BlockSpec((1, ts, D), lambda b, si: (b, si, 0)),
        ),
        out_shape=(
            jax.ShapeDtypeStruct((B, S, D), bf16),
            jax.ShapeDtypeStruct((B, S, D), bf16),
            jax.ShapeDtypeStruct((B, S, D), bf16),
        ),
        compiler_params=pltpu.CompilerParams(
            dimension_semantics=("parallel", "parallel"),
            vmem_limit_bytes=_vmem_limit_bytes(proj_vmem)),
    )(x16, wqkv_t, bqkv)

    # ---------------- Flash attention + output projection ----------------
    attn_vmem = (2 * tq * D * 2            # q block
                 + 2 * 2 * tk * D * 2      # k and v blocks
                 + D * D * 2 + D * 4       # out-proj weight + bias (single-buffered)
                 + 2 * tq * D * 4          # output block (double-buffered f32)
                 + tq * D * 4              # acc scratch
                 + 2 * tq * 128 * 4        # m/l scratch (lane-padded)
                 + 6 * tq * tk * 4)        # live score/exp tiles (slack)

    attn_kernel = functools.partial(_flash_attn_kernel, num_heads=H,
                                    seq_len=S, block_k=tk)
    out = pl.pallas_call(
        attn_kernel,
        grid=(B, n_qt, n_kt),
        in_specs=[
            pl.BlockSpec((1, tq, D), lambda b, qi, kj: (b, qi, 0)),   # Q tile
            pl.BlockSpec((1, tk, D), lambda b, qi, kj: (b, kj, 0)),   # K tile
            pl.BlockSpec((1, tk, D), lambda b, qi, kj: (b, kj, 0)),   # V tile
            pl.BlockSpec((D, D), lambda b, qi, kj: (0, 0),
                         pipeline_mode=pl.Buffered(1)),               # Wo^T
            pl.BlockSpec((1, D), lambda b, qi, kj: (0, 0),
                         pipeline_mode=pl.Buffered(1)),               # bo
        ],
        out_specs=pl.BlockSpec((1, tq, D), lambda b, qi, kj: (b, qi, 0)),
        out_shape=jax.ShapeDtypeStruct((B, S, D), hidden_states.dtype),
        scratch_shapes=[
            pltpu.VMEM((tq, H), jnp.float32),    # running max
            pltpu.VMEM((tq, H), jnp.float32),    # running denom
            pltpu.VMEM((tq, D), jnp.float32),    # unnormalized context
        ],
        compiler_params=pltpu.CompilerParams(
            dimension_semantics=("parallel", "parallel", "arbitrary"),
            vmem_limit_bytes=_vmem_limit_bytes(attn_vmem)),
    )(q_b, k_b, v_b, wo_t, bo)
    return out


# ---------------------------------------------------------------------------
# Pure-JAX f32 reference mirroring the PyTorch forward exactly.
# ---------------------------------------------------------------------------
def reference_attention(x, params, num_heads):
    B, S, D = x.shape
    H = num_heads
    Hd = D // H
    scale = Hd ** (-0.5)

    def lin(t, w, b):
        return t @ w.T + b

    q = lin(x, params['wq'], params['bq']) * scale
    k = lin(x, params['wk'], params['bk'])
    v = lin(x, params['wv'], params['bv'])

    def shape(t):
        return t.reshape(B, S, H, Hd).transpose(0, 2, 1, 3)   # (B, H, S, Hd)

    q, k, v = shape(q), shape(k), shape(v)
    scores = jnp.einsum('bhqe,bhke->bhqk', q, k)
    p = jax.nn.softmax(scores, axis=-1)
    ctx = jnp.einsum('bhqk,bhke->bhqe', p, v)
    ctx = ctx.transpose(0, 2, 1, 3).reshape(B, S, D)
    return lin(ctx, params['wo'], params['bo'])


if __name__ == "__main__":
    B, S, D, H = 2, 8, 32, 4

    key = jax.random.PRNGKey(0)
    keys = jax.random.split(key, 9)
    params = {
        'wq': jax.random.normal(keys[0], (D, D), jnp.float32) * 0.1,
        'bq': jax.random.normal(keys[1], (D,), jnp.float32) * 0.1,
        'wk': jax.random.normal(keys[2], (D, D), jnp.float32) * 0.1,
        'bk': jax.random.normal(keys[3], (D,), jnp.float32) * 0.1,
        'wv': jax.random.normal(keys[4], (D, D), jnp.float32) * 0.1,
        'bv': jax.random.normal(keys[5], (D,), jnp.float32) * 0.1,
        'wo': jax.random.normal(keys[6], (D, D), jnp.float32) * 0.1,
        'bo': jax.random.normal(keys[7], (D,), jnp.float32) * 0.1,
    }
    x = jax.random.normal(keys[8], (B, S, D), jnp.float32)

    out = multiway_attention(x, params, H)
    out = jax.block_until_ready(out)

    ref_out = reference_attention(x, params, H)
    # bf16 MXU inputs / bf16 exp with f32 accumulation and approx reciprocal
    # normalization -> loosened tolerance vs pure-f32 reference.
    np.testing.assert_allclose(np.asarray(out), np.asarray(ref_out),
                               rtol=2e-2, atol=2e-2)

    print("KERNEL_OK")
</pallas_src>

<mosaic_0001>
module attributes {stable_mosaic.version = 11 : i64} {
  func.func @_qkv_proj_kernel(%arg0: i32, %arg1: i32, %arg2: memref<1x8x32xbf16, #tpu.memory_space<vmem>>, %arg3: memref<32x96xbf16, #tpu.memory_space<vmem>>, %arg4: memref<1x96xf32, #tpu.memory_space<vmem>>, %arg5: memref<1x8x32xbf16, #tpu.memory_space<vmem>>, %arg6: memref<1x8x32xbf16, #tpu.memory_space<vmem>>, %arg7: memref<1x8x32xbf16, #tpu.memory_space<vmem>>) attributes {dimension_semantics = [#tpu.dimension_semantics<parallel>, #tpu.dimension_semantics<parallel>], iteration_bounds = array<i64: 2, 1>, scalar_prefetch = 0 : i64, scratch_operands = 0 : i64, tpu.core_type = #tpu.core_type<tc>, window_params = [{transform_indices = @transform_0, window_bounds = array<i64: 1, 8, 32>}, {pipeline_mode = #tpu.pipeline_mode<synchronous>, transform_indices = @transform_1, window_bounds = array<i64: 32, 96>}, {pipeline_mode = #tpu.pipeline_mode<synchronous>, transform_indices = @transform_2, window_bounds = array<i64: 1, 96>}, {transform_indices = @transform_3, window_bounds = array<i64: 1, 8, 32>}, {transform_indices = @transform_4, window_bounds = array<i64: 1, 8, 32>}, {transform_indices = @transform_5, window_bounds = array<i64: 1, 8, 32>}]} {
    %c0 = arith.constant 0 : index
    %c0_0 = arith.constant 0 : index
    %c0_1 = arith.constant 0 : index
    %0 = vector.load %arg2[%c0, %c0_0, %c0_1] : memref<1x8x32xbf16, #tpu.memory_space<vmem>>, vector<1x8x32xbf16>
    %1 = vector.shape_cast %0 : vector<1x8x32xbf16> to vector<8x32xbf16>
    %c0_2 = arith.constant 0 : index
    %c0_3 = arith.constant 0 : index
    %2 = vector.load %arg3[%c0_2, %c0_3] : memref<32x96xbf16, #tpu.memory_space<vmem>>, vector<32x96xbf16>
    %cst = arith.constant dense<0.000000e+00> : vector<8x96xf32>
    %3 = tpu.matmul %1, %2, %cst {dimension_numbers = #tpu.dot_dimension_numbers<[1], [0], [0], [1], [0, 0, 1, 1], [], []>} : vector<8x32xbf16>, vector<32x96xbf16>, vector<8x96xf32> -> vector<8x96xf32>
    %c0_4 = arith.constant 0 : index
    %c0_5 = arith.constant 0 : index
    %4 = vector.load %arg4[%c0_4, %c0_5] : memref<1x96xf32, #tpu.memory_space<vmem>>, vector<1x96xf32>
    %5 = vector.broadcast %4 : vector<1x96xf32> to vector<8x96xf32>
    %6 = arith.addf %3, %5 : vector<8x96xf32>
    %7 = arith.truncf %6 : vector<8x96xf32> to vector<8x96xbf16>
    %8 = vector.extract_strided_slice %7 {offsets = [0, 0], sizes = [8, 32], strides = [1, 1]} : vector<8x96xbf16> to vector<8x32xbf16>
    %c0_6 = arith.constant 0 : index
    %c0_7 = arith.constant 0 : index
    %c0_8 = arith.constant 0 : index
    %9 = vector.load %arg5[%c0_6, %c0_7, %c0_8] : memref<1x8x32xbf16, #tpu.memory_space<vmem>>, vector<1x8x32xbf16>
    %10 = vector.shape_cast %9 : vector<1x8x32xbf16> to vector<8x32xbf16>
    %11 = vector.shape_cast %8 : vector<8x32xbf16> to vector<1x8x32xbf16>
    tpu.vector_store %arg5[%c0_6, %c0_7, %c0_8], %11 {strides = array<i32>} : memref<1x8x32xbf16, #tpu.memory_space<vmem>>, vector<1x8x32xbf16>,
    %12 = vector.extract_strided_slice %7 {offsets = [0, 32], sizes = [8, 32], strides = [1, 1]} : vector<8x96xbf16> to vector<8x32xbf16>
    %c0_9 = arith.constant 0 : index
    %c0_10 = arith.constant 0 : index
    %c0_11 = arith.constant 0 : index
    %13 = vector.load %arg6[%c0_9, %c0_10, %c0_11] : memref<1x8x32xbf16, #tpu.memory_space<vmem>>, vector<1x8x32xbf16>
    %14 = vector.shape_cast %13 : vector<1x8x32xbf16> to vector<8x32xbf16>
    %15 = vector.shape_cast %12 : vector<8x32xbf16> to vector<1x8x32xbf16>
    tpu.vector_store %arg6[%c0_9, %c0_10, %c0_11], %15 {strides = array<i32>} : memref<1x8x32xbf16, #tpu.memory_space<vmem>>, vector<1x8x32xbf16>,
    %16 = vector.extract_strided_slice %7 {offsets = [0, 64], sizes = [8, 32], strides = [1, 1]} : vector<8x96xbf16> to vector<8x32xbf16>
    %c0_12 = arith.constant 0 : index
    %c0_13 = arith.constant 0 : index
    %c0_14 = arith.constant 0 : index
    %17 = vector.load %arg7[%c0_12, %c0_13, %c0_14] : memref<1x8x32xbf16, #tpu.memory_space<vmem>>, vector<1x8x32xbf16>
    %18 = vector.shape_cast %17 : vector<1x8x32xbf16> to vector<8x32xbf16>
    %19 = vector.shape_cast %16 : vector<8x32xbf16> to vector<1x8x32xbf16>
    tpu.vector_store %arg7[%c0_12, %c0_13, %c0_14], %19 {strides = array<i32>} : memref<1x8x32xbf16, #tpu.memory_space<vmem>>, vector<1x8x32xbf16>,
    return
  }
  func.func @transform_0(%arg0: i32, %arg1: i32) -> (i32, i32, i32) {
    %c0_i32 = arith.constant 0 : i32
    %c0_i32_0 = arith.constant 0 : i32
    return %arg0, %arg1, %c0_i32 : i32, i32, i32
  }
  func.func @transform_1(%arg0: i32, %arg1: i32) -> (i32, i32) {
    %c0_i32 = arith.constant 0 : i32
    %c0_i32_0 = arith.constant 0 : i32
    %c0_i32_1 = arith.constant 0 : i32
    return %c0_i32, %c0_i32_0 : i32, i32
  }
  func.func @transform_2(%arg0: i32, %arg1: i32) -> (i32, i32) {
    %c0_i32 = arith.constant 0 : i32
    %c0_i32_0 = arith.constant 0 : i32
    %c0_i32_1 = arith.constant 0 : i32
    return %c0_i32, %c0_i32_0 : i32, i32
  }
  func.func @transform_3(%arg0: i32, %arg1: i32) -> (i32, i32, i32) {
    %c0_i32 = arith.constant 0 : i32
    %c0_i32_0 = arith.constant 0 : i32
    return %arg0, %arg1, %c0_i32 : i32, i32, i32
  }
  func.func @transform_4(%arg0: i32, %arg1: i32) -> (i32, i32, i32) {
    %c0_i32 = arith.constant 0 : i32
    %c0_i32_0 = arith.constant 0 : i32
    return %arg0, %arg1, %c0_i32 : i32, i32, i32
  }
  func.func @transform_5(%arg0: i32, %arg1: i32) -> (i32, i32, i32) {
    %c0_i32 = arith.constant 0 : i32
    %c0_i32_0 = arith.constant 0 : i32
    return %arg0, %arg1, %c0_i32 : i32, i32, i32
  }
}

</mosaic_0001>

<bundles_post_ra>
// kernel: tpu_custom_call.1
= control target key start
LH: loop header
LB: loop body
LE: loop exit
PB: predicated region body
PF: predicated region fallthrough
CT: control target
= control target key end

     0   :  { %s1196_s0 = inlined_call_operand.hbm [shape: bf16[2,8,32], index: 0, kind: input, shape index: {}]   ;;  %s1197_s1 = inlined_call_operand.hbm [shape: bf16[32,96], index: 1, kind: input, shape index: {}]   ;;  %s1198_s2 = inlined_call_operand.vmem [shape: f32[1,96], index: 2, kind: input, shape index: {}]   ;;  %s1199_s3 = inlined_call_operand.hbm [shape: bf16[2,8,32], index: 3, kind: output, shape index: {0}]   ;;  %s1200_s4 = inlined_call_operand.hbm [shape: bf16[2,8,32], index: 4, kind: output, shape index: {1}]   ;;  %s1201_s5 = inlined_call_operand.hbm [shape: bf16[2,8,32], index: 5, kind: output, shape index: {2}]  }
   0x1   :  { %1205 = sst [smem:[#allocation16_spill]] %s1197_s1 }
   0x2   :  { %11 = vsyncpa [#allocation3], 0 }
   0x3   :  { %13 = vsyncpa [#allocation3 + $0x1], 0 }
   0x4   :  { %14 = vsyncpa [#allocation6], 0 }
   0x5   :  { %15 = vsyncpa [#allocation4], 0 }
   0x6   :  { %17 = vsyncpa [#allocation4 + $0x1], 0 }
   0x7   :  { %18 = vsyncpa [#allocation9], 0 }
   0x8   :  { %20 = vsyncpa [#allocation9 + $0x1], 0  ;;  %s949_s18 = smov 0   ;;  %s951_s19 = smov 0  }
   0x9   :  { %s953_s20 = smov 0   ;;  %s955_s21 = smov 0  }
   0xa   :  { %s957_s22 = smov 0   ;;  %s959_s23 = smov 0  }
   0xb LB: > { %s980_s24 = sadd.s32 4294967295, %s906_s23   ;;  %s1202_s25 = sadd.s32 4294967294, %s906_s23   ;;  %s906_s23 = sphi %s959_s23, %s26_s23   ;;  %s902_s22 = sphi %s957_s22, %s1226_s22   ;;  %s898_s21 = sphi %s955_s21, %s1225_s21   ;;  %s894_s20 = sphi %s953_s20, %s1224_s20   ;;  %s890_s19 = sphi %s951_s19, %s1223_s19   ;;  %s886_s18 = sphi %s949_s18, %s1222_s18  }
   0xc   : > { %p60_p0 = scmp.ne.s32.totalorder %s890_s19, %s886_s18  ;;  %p1204_p1 = scmp.eq.s32.totalorder %s980_s24, 0 }
   0xd   : > { %p134_p3 = scmp.eq.s32.totalorder %s1202_s25, 1  ;;  %p585_p5 = scmp.ge.s32.totalorder %s906_s23, 1 }
   0xe   : > { %p991_p4 = por %p1204_p1, %p60_p0  ;;  %p197_p7 = scmp.lt.s32.totalorder %s906_s23, 3 }
   0xf   : > { %p996_p6 = por %p134_p3, %p60_p0  ;;  %s908_s29 = smov [#allocation5]  }
  0x10   : > { %p1001_p8 = pnand %p585_p5, %p197_p7  ;;  %s209_s30 = sshll.u32 %s908_s29, 4  ;;  %s210_s30 = int_to_ptr.vmem [resolvable:$true] %s209_s30 }
  0x11   : > { %s1207_s27 = scalar_select %p996_p6, 1, 0 }
  0x12   : > { %p633_p9 = pneg %p1001_p8  ;;  %s38_s7 = sadd.s32 1, %s902_s22 }
  0x13   : > { %s723_s8 = scalar_lea.vmem %s210_s30, 256  ;;  %p731_p5 = scmp.lt.s32.totalorder %s210_s30, %s210_s30 }
  0x14   : > { %p1010_p11 = pnand %p633_p9, %p1204_p1  ;;  %p724_p13 = scmp.ne.s32.totalorder %s210_s30, %s723_s8 }
  0x15   : > { %p732_p7 = scmp.lt.s32.totalorder %s723_s8, %s723_s8 }
  0x16   : > { %p714_p12 = pneg %p1010_p11 }
  0x17   : > { %p733_p2 = por %p732_p7, %p731_p5 }
  0x18   : > { %p726_p0 = pnand %p724_p13, %p714_p12 }
  0x1a   : > { %p727_p3 = pneg %p726_p0 }
  0x1c   : > { %p734_p6 = pnand %p733_p2, %p727_p3 }
  0x1e   : > { %737 = shalt.err (!%p734_p6)
}
  0x1f   : > { %s909_s9 = smov 64   ;;  %s910_s10 = smov 4  }
  0x20   : > { %s1210_s1 = sld [smem:[#allocation16_spill]]  ;;  %p40_p2 = scmp.ge.s32.totalorder %s38_s7, 2 }
  0x21   : > { %s47_s13 = sadd.s32 1, %s894_s20  ;;  %p54_p6 = scmp.ne.s32.totalorder %s894_s20, %s890_s19 }
  0x22   : > { %p55_p9 = scmp.eq.s32.totalorder %s906_s23, 0  ;;  %s1228_s7 = smov (%p40_p2, %s38_s7), 0 }
  0x23   : > { %1211 = sst [smem:[#allocation15_spill]] %s1228_s7  ;;  %p1213_p13 = scmp.eq.s32.totalorder %s980_s24, 1 }
  0x24   : > { %p1028_p12 = por %p55_p9, %p54_p6  ;;  %s42_s16 = ssub.s32 %s902_s22, %s1228_s7 }
  0x25   : > { %p1034_p0 = por %p1213_p13, %p54_p6  ;;  %p652_p3 = scmp.lt.s32.totalorder %s906_s23, 2 }
  0x26   : > { %636 = dma.hbm_to_vmem [thread:$0]  (!%p1010_p11), %s1210_s1, 256, %s210_s30, [#allocation6], %s909_s9, %s909_s9, %s910_s10  }
  0x27   : > { %p45_p11 = scmp.eq.s32.totalorder %s42_s16, 0  ;;  %s226_s17 = sand.u32 1, %s894_s20  }
  0x28   : > { %s588_s29 = sshll.u32 %s226_s17, 2  ;;  %s589_s6 = sshll.u32 %s902_s22, 6 }
  0x29   : > { %s1043_s30 = scalar_select %p45_p11, %s894_s20, %s47_s13  }
  0x2a   : > { %s236_s10 = scalar_lea.hbm %s1196_s0, %s589_s6  ;;  %s230_s11 = scalar_lea.vmem [#allocation2], %s588_s29 }
  0x2b   : > { %s238_s12 = sshll.u32 %s230_s11, 4  ;;  %p1051_p5 = pnand %p652_p3, %p1028_p12  ;;  %s239_s12 = int_to_ptr.vmem [resolvable:$true] %s238_s12 }
  0x2c   : > { %s227_s1 = scalar_lea.sflag [#allocation3], %s226_s17  ;;  %s751_s16 = scalar_lea.vmem %s239_s12, 64 }
  0x2d   : > { %p740_p7 = pneg %p1051_p5  ;;  %p752_p2 = scmp.ne.s32.totalorder %s239_s12, %s751_s16 }
  0x2e   : > { %s911_s13 = smov [#allocation2]  }
  0x2f   : > { %p754_p6 = pnand %p752_p2, %p740_p7  ;;  %s756_s7 = sshll.u32 %s911_s13, 4  ;;  %s757_s7 = int_to_ptr.vmem [resolvable:$false] %s756_s7 }
  0x30   : > { %s758_s6 = scalar_lea.vmem %s757_s7, 128  ;;  %p759_p13 = scmp.lt.s32.totalorder %s239_s12, %s757_s7 }
  0x31   : > { %p755_p9 = pneg %p754_p6  ;;  %p760_p11 = scmp.lt.s32.totalorder %s758_s6, %s751_s16 }
  0x33   : > { %p761_p10 = por %p760_p11, %p759_p13 }
  0x35   : > { %p762_p1 = pnand %p761_p10, %p755_p9 }
  0x37   : > { %765 = shalt.err (!%p762_p1)
}
  0x38   : > { %640 = dma.hbm_to_vmem [thread:$0]  (!%p1051_p5), %s236_s10, 64, %s239_s12, %s227_s1  }
  0x39   : > { %247 = sbr.rel (%p1001_p8) target bundleno = 422 (0x1a6), region = 32  ;;  %s1062_s14 = sand.u32 (!%p1001_p8), 1, %s890_s19  }
  0x3a   : > { %s1065_s17 = sshll.u32 (!%p1001_p8), %s1062_s14, 2  ;;  %s250_s7 = scalar_lea.sflag (!%p1001_p8), [#allocation3], %s1062_s14 }
  0x3b   : > { %s253_s29 = scalar_lea.vmem (!%p1001_p8), [#allocation2], %s1065_s17 }
  0x3e   : > { %869 = dma.done.wait (%p991_p4), %s250_s7, 64  }
  0x3f   : > { %871 = vsyncadd (%p991_p4), %s250_s7, 4294967232  ;;  %p1216_p1 = scmp.eq.s32.totalorder %s980_s24, 0 }
  0x41   : > { %873 = dma.done.wait (%p1216_p1), [#allocation6], 256   ;;  %p1217_p8 = pmov %p1216_p1 }
  0x42   : > { %v912_v0 = vmov 0.0   ;;  %vm913_vm0 = vmmov 0   ;;  %v710_v1 = vld [vmem:[#allocation5 + $0x8] sm:$0xff]   ;;  %v711_v2 = vld [vmem:[#allocation5] sm:$0xff]   ;;  %v295_v3 = vld [vmem:[%s253_s29] sm:$0xf] }
  0x43   : > { %875 = vsyncadd (%p1217_p8), [#allocation6], 4294967040  ;;  %613 = vmatprep.subr.bf16.mxu0 %v912_v0  ;;  %617 = vmatprep.mubr.msk.bf16.mxu0 %vm913_vm0, %v912_v0  ;;  %vm319_vm1 = vcmask 261120   ;;  %v596_v4 = vld [vmem:[%s1198_s2] ss:$0 sm:$0xff]  ;;  %s1081_s26 = sshll.u32 %s898_s21, 6 }
  0x44   : > { %614 = vmatpush3.bf16.msra.mxu0 %v710_v1  ;;  %s279_s28 = scalar_lea.vmem [#allocation7], %s1065_s17  ;;  %vm364_vm2 = vcmask 257024   ;;  %s1088_s11 = scalar_lea.hbm %s1199_s3, %s1081_s26 }
  0x45   : > { %615 = vmatprep.subr.bf16.mxu0 %v912_v0  ;;  %s402_s8 = sshll.u32 %s279_s28, 4  ;;  %s914_s21 = smov 96   ;;  %s1090_s8 = int_to_ptr.vmem [resolvable:$true] %s402_s8 }
  0x46   : > { %s378_s12 = scalar_lea.sflag [#allocation4], %s1062_s14  ;;  %s766_s16 = scalar_lea.vmem %s1090_s8, 64 }
  0x47   : > { %p767_p4 = scmp.ne.s32.totalorder %s1090_s8, %s766_s16  ;;  %s915_s13 = smov [#allocation7]  }
  0x48   : > { %616 = vmatpush3.bf16.msra.mxu0 %v711_v2  ;;  %s770_s6 = sshll.u32 %s915_s13, 4  ;;  %s771_s6 = int_to_ptr.vmem [resolvable:$false] %s770_s6 }
  0x49   : > { %p768_p10 = pnand %p767_p4, %p1034_p0  ;;  %s772_s7 = scalar_lea.vmem %s771_s6, 128 }
  0x4a   : > { %p773_p3 = scmp.lt.s32.totalorder %s1090_s8, %s771_s6  ;;  %p774_p5 = scmp.lt.s32.totalorder %s772_s7, %s766_s16 }
  0x4b   : > { %618 = vmatmul.mubr.msk.bf16.vlgmr.msra.gmra.mxu0 %vm319_vm1, %v295_v3  ;;  %p769_p12 = pneg %p768_p10 }
  0x4c   : > { %p775_p7 = por %p774_p5, %p773_p3 }
  0x4e   : > { %p776_p2 = pnand %p775_p7, %p769_p12 }
 0x10b   : > { %v357_v5 = vpop.f32.mrf.mxu0 }
 0x10c   : > { %v358_v6 = vadd.f32 %v596_v4, %v357_v5 }
 0x10d   : > { %v619_v7 = vpop.f32.mrf.mxu0 }
 0x10e   : > { %v363_v8 = vpack.c.bf16 %v358_v6, %v358_v6 }
 0x10f   : > { %v360_v9 = vpop.f32.mrf.mxu0 }
 0x110   : > { %369 = vrot.lane.b32.xlu0 %v363_v8, %s914_s21  ;;  %365 = vst.msk [vmem:[%s279_s28] sm:$0xf] %vm364_vm2, %v363_v8 }
 0x111   : > { %v620_v10 = vpop.f32.mrf.mxu0 }
 0x112   : > { %779 = shalt.err (!%p776_p2)
}
 0x113   : > { %s780_s29 = scalar_lea.hbm %s1088_s11, 64  ;;  %s784_s25 = scalar_lea.hbm %s1199_s3, 128 }
 0x114   : > { %p781_p6 = scmp.ne.s32.totalorder %s1088_s11, %s780_s29  ;;  %p785_p11 = scmp.lt.s32.totalorder %s1088_s11, %s1199_s3 }
 0x115   : > { %p786_p1 = scmp.lt.s32.totalorder %s784_s25, %s780_s29 }
 0x116   : > { %p782_p9 = pnand %p781_p6, %p1034_p0 }
 0x117   : > { %p787_p8 = por %p786_p1, %p785_p11 }
 0x118   : > { %p783_p13 = pneg %p782_p9 }
 0x11a   : > { %p788_p4 = pnand %p787_p8, %p783_p13 }
 0x11c   : > { %791 = shalt.err (!%p788_p4)
}
 0x11d   : > { %627 = dma.vmem_to_hbm [thread:$0]  (%p1034_p0), %s1090_s8, 64, %s1088_s11, %s378_s12  }
 0x11e   : > { %s916_s10 = smov 64   ;;  %s382_s21 = sand.u32 1, %s980_s24  }
 0x11f   : > { %373 = vrot.lane.b32.xlu0 %v363_v8, %s916_s10  ;;  %s286_s16 = scalar_lea.vmem [#allocation8], %s1065_s17  ;;  %s1120_s29 = scalar_lea.hbm %s1200_s4, %s1081_s26 }
 0x120   : > { %s416_s13 = sshll.u32 %s286_s16, 4  ;;  %s293_s14 = scalar_lea.vmem [#allocation10], %s1065_s17  ;;  %s1122_s13 = int_to_ptr.vmem [resolvable:$true] %s416_s13 }
 0x121   : > { %s430_s1 = sshll.u32 %s293_s14, 4  ;;  %s1128_s8 = scalar_lea.sflag [#allocation9], %s382_s21  ;;  %s431_s1 = int_to_ptr.vmem [resolvable:$true] %s430_s1 }
 0x122   : > { %s792_s24 = scalar_lea.vmem %s1122_s13, 64  ;;  %s917_s11 = smov [#allocation8]  }
 0x123   : > { %p793_p10 = scmp.ne.s32.totalorder %s1122_s13, %s792_s24  ;;  %s796_s12 = sshll.u32 %s917_s11, 4  ;;  %s797_s12 = int_to_ptr.vmem [resolvable:$false] %s796_s12 }
 0x124   : > { %s798_s25 = scalar_lea.vmem %s797_s12, 128  ;;  %p799_p5 = scmp.lt.s32.totalorder %s1122_s13, %s797_s12 }
 0x125   : > { %p794_p12 = pnand %p793_p10, %p1034_p0  ;;  %p800_p7 = scmp.lt.s32.totalorder %s798_s25, %s792_s24 }
 0x127   : > { %p795_p3 = pneg %p794_p12  ;;  %p801_p2 = por %p800_p7, %p799_p5 }
 0x129   : > { %p802_p6 = pnand %p801_p2, %p795_p3 }
 0x182   : > { %v370_v11 = vpop.permute.xlu0 %369 }
 0x183   : > { %372 = vst.msk [vmem:[%s286_s16] sm:$0xf] %vm364_vm2, %v370_v11 }
 0x184   : > { %805 = shalt.err (!%p802_p6)
}
 0x185   : > { %s806_s28 = scalar_lea.hbm %s1120_s29, 64  ;;  %s810_s21 = scalar_lea.hbm %s1200_s4, 128 }
 0x186   : > { %p807_p9 = scmp.ne.s32.totalorder %s1120_s29, %s806_s28  ;;  %p811_p1 = scmp.lt.s32.totalorder %s1120_s29, %s1200_s4 }
 0x187   : > { %p812_p8 = scmp.lt.s32.totalorder %s810_s21, %s806_s28 }
 0x188   : > { %p808_p13 = pnand %p807_p9, %p1034_p0 }
 0x189   : > { %p813_p4 = por %p812_p8, %p811_p1 }
 0x18a   : > { %p809_p11 = pneg %p808_p13 }
 0x18c   : > { %p814_p10 = pnand %p813_p4, %p809_p11 }
 0x18e   : > { %817 = shalt.err (!%p814_p10)
}
 0x18f   : > { %628 = dma.vmem_to_hbm [thread:$0]  (%p1034_p0), %s1122_s13, 64, %s1120_s29, %s1128_s8  }
 0x190   : > { %s428_s11 = scalar_lea.hbm %s1201_s5, %s1081_s26  ;;  %s818_s12 = scalar_lea.vmem %s431_s1, 64 }
 0x191   : > { %v374_v12 = vpop.permute.xlu0 %373  ;;  %p819_p12 = scmp.ne.s32.totalorder %s431_s1, %s818_s12  ;;  %s918_s25 = smov [#allocation10]  }
 0x192   : > { %376 = vst.msk [vmem:[%s293_s14] sm:$0xf] %vm364_vm2, %v374_v12  ;;  %s822_s28 = sshll.u32 %s918_s25, 4  ;;  %s823_s28 = int_to_ptr.vmem [resolvable:$false] %s822_s28 }
 0x193   : > { %p820_p3 = pnand %p819_p12, %p1034_p0  ;;  %s824_s9 = scalar_lea.vmem %s823_s28, 128 }
 0x194   : > { %p825_p7 = scmp.lt.s32.totalorder %s431_s1, %s823_s28  ;;  %p826_p2 = scmp.lt.s32.totalorder %s824_s9, %s818_s12 }
 0x195   : > { %p821_p5 = pneg %p820_p3 }
 0x196   : > { %p827_p6 = por %p826_p2, %p825_p7 }
 0x198   : > { %p828_p9 = pnand %p827_p6, %p821_p5 }
 0x19a   : > { %831 = shalt.err (!%p828_p9)
}
 0x19b   : > { %s832_s26 = scalar_lea.hbm %s428_s11, 64  ;;  %s836_s29 = scalar_lea.hbm %s1201_s5, 128 }
 0x19c   : > { %p833_p13 = scmp.ne.s32.totalorder %s428_s11, %s832_s26  ;;  %p837_p8 = scmp.lt.s32.totalorder %s428_s11, %s1201_s5 }
 0x19d   : > { %p838_p4 = scmp.lt.s32.totalorder %s836_s29, %s832_s26 }
 0x19e   : > { %p834_p11 = pnand %p833_p13, %p1034_p0 }
 0x19f   : > { %p839_p10 = por %p838_p4, %p837_p8 }
 0x1a0   : > { %p835_p1 = pneg %p834_p11 }
 0x1a2   : > { %p840_p12 = pnand %p839_p10, %p835_p1 }
 0x1a4   : > { %843 = shalt.err (!%p840_p12)
}
 0x1a5   : > { %629 = dma.vmem_to_hbm [thread:$0]  (%p1034_p0), %s431_s1, 64, %s428_s11, %s1128_s8  }
 0x1a6 PF: > { %s442_s21 = sand.u32 1, %s886_s18   ;;  %p1218_p3 = scmp.ne.s32.totalorder %s1207_s27, 0 }
 0x1a7   : > { %p1219_p5 = scmp.ge.s32.totalorder %s906_s23, 2  ;;  %s443_s16 = scalar_lea.sflag [#allocation4], %s442_s21 }
 0x1a9   : > { %p642_p7 = pnand %p1219_p5, %p1218_p3 }
 0x1ab   : > { %p643_p2 = pneg %p642_p7 }
 0x1ad   : > { %877 = dma.done.wait (%p643_p2), %s443_s16, 64  }
 0x1ae   : > { %879 = vsyncadd (%p643_p2), %s443_s16, 4294967232  ;;  %s1220_s6 = sadd.s32 4294967294, %s906_s23  }
 0x1af   : > { %s451_s7 = sand.u32 1, %s1220_s6  }
 0x1b0   : > { %s452_s24 = scalar_lea.sflag [#allocation9], %s451_s7 }
 0x1b1   : > { %881 = dma.done.wait (%p643_p2), %s452_s24, 128  }
 0x1b2   : > { %883 = vsyncadd (%p643_p2), %s452_s24, 4294967168  ;;  %s26_s23 = sadd.s32 1, %s906_s23   ;;  %s1221_s27 = sld [smem:[#allocation15_spill]] }
 0x1b3   : > { %p23_p0 = scmp.ge.s32.totalorder %s26_s23, 4   ;;  %s1222_s18 = smov %s890_s19 }
 0x1b4   : > { %s1223_s19 = smov %s894_s20  ;;  %s1224_s20 = smov %s1043_s30 }
 0x1b5   : > { %s1225_s21 = smov %s902_s22  ;;  %25 = sbr.rel (!%p23_p0) target bundleno = 11 (0xb), region = 113 }
 0x1b8   : > { %s1226_s22 = smov %s1221_s27 }
 0x1ba   :  { %466 = vsyncpa [#allocation3], 1 }
 0x1bb   :  { %468 = vsyncpa [#allocation3 + $0x1], 1 }
 0x1bc   :  { %469 = vsyncpa [#allocation6], 1 }
 0x1bd   :  { %470 = vsyncpa [#allocation4], 1 }
 0x1be   :  { %472 = vsyncpa [#allocation4 + $0x1], 1 }
 0x1bf   :  { %473 = vsyncpa [#allocation9], 1 }
 0x1c0   :  { %475 = vsyncpa [#allocation9 + $0x1], 1 }

</bundles_post_ra>
